<compile_context>
chip_gen: v6e
topology: v6e:2x2x1
jax: 0.10.0
libtpu: 0.0.40
codegen_flags: <defaults>
</compile_context>

<pallas_src>
import functools

import jax
import jax.numpy as jnp
from jax.experimental import pallas as pl
from jax.experimental.pallas import tpu as pltpu


def _round_up(x, m):
    return ((x + m - 1) // m) * m


def _vmem_capacity_bytes():
    try:
        return int(pltpu.get_tpu_info().vmem_capacity_bytes)
    except Exception:
        return 64 << 20  # conservative (v7x per-TC); safe everywhere


def _num_tensorcores():
    """Best-effort TensorCore-per-chip count (2 on v7x megacore, else 1)."""
    try:
        info = pltpu.get_tpu_info()
        for attr in ("num_cores", "core_count", "num_tensorcores", "tensor_core_count"):
            v = getattr(info, attr, None)
            if isinstance(v, int) and v > 0:
                return v
    except Exception:
        pass
    try:
        kind = (jax.devices()[0].device_kind or "").lower()
        if "v7" in kind:
            return 2
    except Exception:
        pass
    return 1


def _choose_tile_rows(n, c, itemsize, tile_budget_bytes, logits_bufs=2):
    """Batch-tile rows: sublane-aligned, sized against a VMEM byte budget."""
    sub = {4: 8, 2: 16, 1: 32}.get(itemsize, 8)
    cw = _round_up(c, 128)                  # lane-padded class width in VMEM
    row_bytes = (
        logits_bufs * cw * itemsize         # pipelined logits tile buffers
        + 2 * 128 * 4                       # double-buffered lane-padded int32 targets
        + 3 * cw * 4                        # live full-width f32 temporaries (x, mask, exp)
        + 6 * 128 * 4                       # live per-row column temporaries (m, denom, ...)
    )
    max_rows = max(sub, tile_budget_bytes // row_bytes)
    tile = min(max_rows, _round_up(n, sub))
    tile = max(sub, (tile // sub) * sub)
    return tile, max_rows


def _focal_loss_kernel(logits_ref, targets_ref, alpha_ref, out_ref, *,
                       gamma, tiles_per_split, n_rows):
    p_id = pl.program_id(0)        # batch split (parallel; megacore on v7x)
    i = pl.program_id(1)           # batch tile inside the split (arbitrary)

    # Zero the per-split lane-dense accumulator at the start of each split.
    @pl.when(i == 0)
    def _init():
        out_ref[...] = jnp.zeros_like(out_ref)

    tn, c = logits_ref.shape
    base = (p_id * tiles_per_split + i) * tn

    # Skip all compute for a fully-masked overshoot tile (odd tile count with
    # a 2-way split: the clamped block is DMA'd but produces nothing).
    @pl.when(base < n_rows)
    def _compute():
        x = logits_ref[...].astype(jnp.float32)          # (TILE_N, C)
        t = targets_ref[...]                              # (TILE_N, 1) int32
        a = alpha_ref[...].astype(jnp.float32)            # (1, C)

        # Mask rows past the true batch size (ragged last tile).
        row = base + jax.lax.broadcasted_iota(jnp.int32, (tn, 1), 0)
        valid = row < n_rows                               # (TILE_N, 1) bool

        # One-hot class mask via iota compare (gather-free scatter_ replacement).
        col = jax.lax.broadcasted_iota(jnp.int32, (tn, c), 1)
        class_mask = (col == t).astype(jnp.float32)        # (TILE_N, C)

        # log-softmax at the target class: no full-width divide, no log(tiny p).
        m = jnp.max(x, axis=1, keepdims=True)                      # (TILE_N, 1)
        e = jnp.exp(x - m)
        denom = jnp.sum(e, axis=1, keepdims=True)                  # (TILE_N, 1)
        x_t = jnp.sum(x * class_mask, axis=1, keepdims=True)       # (TILE_N, 1)
        log_p = (x_t - m) - jnp.log(denom)                         # log softmax[target]
        probs = jnp.exp(log_p)                                     # softmax[target]

        alpha_t = jnp.sum(a * class_mask, axis=1, keepdims=True)   # (TILE_N, 1)

        one_minus_p = 1.0 - probs
        g = float(gamma)
        if g == 2.0:
            focal = one_minus_p * one_minus_p
        elif g.is_integer() and 0.0 <= g <= 8.0:
            gi = int(g)
            focal = jnp.ones_like(one_minus_p)
            for _ in range(gi):
                focal = focal * one_minus_p
        else:
            # x^g via EUP exp/log; exact 0 for x == 0 (matches torch.pow(0, g)).
            gf = jnp.float32(g)
            safe = jnp.maximum(one_minus_p, jnp.float32(1e-30))
            focal = jnp.where(one_minus_p > 0.0, jnp.exp(gf * jnp.log(safe)), 0.0)

        batch_loss = jnp.where(valid, -alpha_t * focal * log_p, 0.0)  # (TILE_N, 1)

        # Accumulate the tile sum into element [0, 0] of the (8, 128) slab.
        tile_sum = jnp.sum(batch_loss, axis=0, keepdims=True)        # (1, 1)
        sl = jax.lax.broadcasted_iota(jnp.int32, (8, 128), 0)
        ln = jax.lax.broadcasted_iota(jnp.int32, (8, 128), 1)
        out_ref[...] += jnp.where((sl == 0) & (ln == 0), tile_sum, 0.0)


def focal_loss(logits, targets, alpha, *, gamma=2.0, size_average=True,
               tile_rows=None, num_splits=None):
    """logits: (N, C) float (f32 or bf16); targets: (N,) int; alpha: (C,) or (C,1)."""
    n, c = logits.shape
    targets2d = targets.reshape(n, 1).astype(jnp.int32)
    alpha_row = jnp.asarray(alpha, jnp.float32).reshape(1, c)

    itemsize = jnp.dtype(logits.dtype).itemsize
    sub = {4: 8, 2: 16, 1: 32}.get(itemsize, 8)

    # Generation-aware VMEM budgeting: ~48 MiB compiler limit on v7x (64 MiB
    # VMEM/TC), ~96 MiB on v5e/v6e (128 MiB); tiles use ~2/3 of that.
    vmem_cap = _vmem_capacity_bytes()
    vmem_limit = int(max(32 << 20, (vmem_cap * 3) // 4))
    tile_budget = (vmem_limit * 2) // 3

    auto_tile, max_rows = _choose_tile_rows(n, c, itemsize, tile_budget, logits_bufs=2)
    deep_pipeline = (tile_rows is None) and (max_rows <= 64)   # huge-C, latency-bound
    if deep_pipeline:
        auto_tile, _ = _choose_tile_rows(n, c, itemsize, tile_budget, logits_bufs=3)

    if tile_rows is not None:
        tile_n = max(sub, _round_up(int(tile_rows), sub))
    else:
        tile_n = auto_tile

    n_tiles = (n + tile_n - 1) // tile_n
    if num_splits is None:
        num_splits = 2 if (n_tiles >= 2 and _num_tensorcores() >= 2) else 1
    num_splits = max(1, int(num_splits))
    tiles_per_split = (n_tiles + num_splits - 1) // num_splits

    def row_block_map(p, i):
        blk = p * tiles_per_split + i
        # Clamp overshoot (odd n_tiles with 2 splits); kernel skips those tiles.
        return (jnp.minimum(blk, n_tiles - 1), 0)

    logits_spec = pl.BlockSpec((tile_n, c), row_block_map)
    if deep_pipeline:
        try:
            logits_spec = pl.BlockSpec((tile_n, c), row_block_map,
                                       pipeline_mode=pl.Buffered(3))
        except TypeError:
            pass  # older BlockSpec signature: fall back to default double-buffering

    kernel = functools.partial(
        _focal_loss_kernel,
        gamma=float(gamma),
        tiles_per_split=tiles_per_split,
        n_rows=n,
    )

    cost = pl.CostEstimate(
        flops=int(8 * n * c),
        transcendentals=int(n * c + 3 * n),
        bytes_accessed=int(n * c * itemsize + n * 4 + c * 4 + num_splits * 8 * 128 * 4),
    )

    partial_sums = pl.pallas_call(
        kernel,
        out_shape=jax.ShapeDtypeStruct((num_splits * 8, 128), jnp.float32),
        grid_spec=pltpu.PrefetchScalarGridSpec(
            num_scalar_prefetch=0,
            grid=(num_splits, tiles_per_split),
            in_specs=[
                logits_spec,                                       # logits tile
                pl.BlockSpec((tile_n, 1), row_block_map),          # targets tile
                pl.BlockSpec((1, c), lambda p, i: (0, 0)),         # alpha (pinned)
            ],
            out_specs=pl.BlockSpec((8, 128), lambda p, i: (p, 0)),  # per-split slab
        ),
        compiler_params=pltpu.CompilerParams(
            dimension_semantics=("parallel", "arbitrary"),
            vmem_limit_bytes=vmem_limit,
        ),
        cost_estimate=cost,
    )(logits, targets2d, alpha_row)

    total = jnp.sum(partial_sums)   # only [p*8, 0] of each split slab is non-zero
    if size_average:
        total = total / jnp.float32(n)
    return total


def _focal_loss_ref(logits, targets, alpha, *, gamma=2.0, size_average=True):
    """Pure-JAX reference mirroring the PyTorch module."""
    n, c = logits.shape
    p = jax.nn.softmax(logits.astype(jnp.float32), axis=1)
    mask = jax.nn.one_hot(targets, c, dtype=jnp.float32)
    probs = jnp.sum(p * mask, axis=1, keepdims=True)
    alpha_t = jnp.asarray(alpha, jnp.float32).reshape(c)[targets].reshape(n, 1)
    log_p = jnp.log(probs)
    batch_loss = -alpha_t * jnp.power(1.0 - probs, gamma) * log_p
    return jnp.mean(batch_loss) if size_average else jnp.sum(batch_loss)


if __name__ == "__main__":
    key = jax.random.PRNGKey(0)
    k1, k2, k3, k4, k5 = jax.random.split(key, 5)

    # Case 1: small batch, uniform alpha (module default alpha=None -> ones),
    # gamma=2, both mean and sum reductions.  Single-tile path.
    N, C = 8, 16
    logits = jax.random.normal(k1, (N, C), dtype=jnp.float32)
    targets = jax.random.randint(k2, (N,), 0, C, dtype=jnp.int32)
    alpha = jnp.ones((C, 1), dtype=jnp.float32)

    loss = jax.block_until_ready(focal_loss(logits, targets, alpha, gamma=2.0))
    ref = _focal_loss_ref(logits, targets, alpha, gamma=2.0)
    assert jnp.allclose(loss, ref, rtol=1e-5, atol=1e-5), (loss, ref)

    loss_sum = jax.block_until_ready(
        focal_loss(logits, targets, alpha, gamma=2.0, size_average=False))
    ref_sum = _focal_loss_ref(logits, targets, alpha, gamma=2.0, size_average=False)
    assert jnp.allclose(loss_sum, ref_sum, rtol=1e-5, atol=1e-5), (loss_sum, ref_sum)

    # Case 2: forced small tiles + 2-way split — exercises multi-tile grid,
    # ragged last tile masking, the clamped/skipped overshoot tile, non-uniform
    # alpha and the non-integer-gamma (exp/log) path.
    N2, C2 = 35, 24
    logits2 = jax.random.normal(k3, (N2, C2), dtype=jnp.float32)
    targets2 = jax.random.randint(k4, (N2,), 0, C2, dtype=jnp.int32)
    alpha2 = jax.random.uniform(k5, (C2, 1), dtype=jnp.float32, minval=0.25, maxval=1.0)

    loss2 = jax.block_until_ready(
        focal_loss(logits2, targets2, alpha2, gamma=1.5, size_average=True,
                   tile_rows=8, num_splits=2))
    ref2 = _focal_loss_ref(logits2, targets2, alpha2, gamma=1.5, size_average=True)
    assert jnp.allclose(loss2, ref2, rtol=1e-5, atol=1e-5), (loss2, ref2)

    print("KERNEL_OK")
</pallas_src>

<mosaic_0001>
module attributes {stable_mosaic.version = 11 : i64} {
  func.func @_focal_loss_kernel(%arg0: i32, %arg1: i32, %arg2: memref<8x16xf32, #tpu.memory_space<vmem>>, %arg3: memref<8x1xi32, #tpu.memory_space<vmem>>, %arg4: memref<1x16xf32, #tpu.memory_space<vmem>>, %arg5: memref<8x128xf32, #tpu.memory_space<vmem>>) attributes {dimension_semantics = [#tpu.dimension_semantics<parallel>, #tpu.dimension_semantics<arbitrary>], iteration_bounds = array<i64: 1, 1>, scalar_prefetch = 0 : i64, scratch_operands = 0 : i64, tpu.core_type = #tpu.core_type<tc>, window_params = [{transform_indices = @transform_0, window_bounds = array<i64: 8, 16>}, {transform_indices = @transform_1, window_bounds = array<i64: 8, 1>}, {pipeline_mode = #tpu.pipeline_mode<synchronous>, transform_indices = @transform_2, window_bounds = array<i64: 1, 16>}, {transform_indices = @transform_3, window_bounds = array<i64: 8, 128>}]} {
    %c0_i32 = arith.constant 0 : i32
    %0 = arith.cmpi eq, %arg1, %c0_i32 : i32
    %1 = arith.extui %0 : i1 to i32
    %c0_i32_0 = arith.constant 0 : i32
    %2 = arith.cmpi ne, %1, %c0_i32_0 : i32
    scf.if %2 {
      %cst = arith.constant 0.000000e+00 : f32
      %9 = vector.broadcast %cst : f32 to vector<8x128xf32>
      %c0 = arith.constant 0 : index
      %c0_3 = arith.constant 0 : index
      %10 = vector.load %arg5[%c0, %c0_3] : memref<8x128xf32, #tpu.memory_space<vmem>>, vector<8x128xf32>
      tpu.vector_store %arg5[%c0, %c0_3], %9 {strides = array<i32>} : memref<8x128xf32, #tpu.memory_space<vmem>>, vector<8x128xf32>,
    } else {
    }
    %c1_i32 = arith.constant 1 : i32
    %3 = arith.muli %arg0, %c1_i32 : i32
    %4 = arith.addi %3, %arg1 : i32
    %c8_i32 = arith.constant 8 : i32
    %5 = arith.muli %4, %c8_i32 : i32
    %c8_i32_1 = arith.constant 8 : i32
    %6 = arith.cmpi slt, %5, %c8_i32_1 : i32
    %7 = arith.extui %6 : i1 to i32
    %c0_i32_2 = arith.constant 0 : i32
    %8 = arith.cmpi ne, %7, %c0_i32_2 : i32
    scf.if %8 {
      %c0 = arith.constant 0 : index
      %c0_3 = arith.constant 0 : index
      %9 = vector.load %arg2[%c0, %c0_3] : memref<8x16xf32, #tpu.memory_space<vmem>>, vector<8x16xf32>
      %c0_4 = arith.constant 0 : index
      %c0_5 = arith.constant 0 : index
      %10 = vector.load %arg3[%c0_4, %c0_5] : memref<8x1xi32, #tpu.memory_space<vmem>>, vector<8x1xi32>
      %c0_6 = arith.constant 0 : index
      %c0_7 = arith.constant 0 : index
      %11 = vector.load %arg4[%c0_6, %c0_7] : memref<1x16xf32, #tpu.memory_space<vmem>>, vector<1x16xf32>
      %12 = tpu.iota {dimensions = array<i32: 0>} : vector<8x1xi32>
      %13 = vector.broadcast %5 : i32 to vector<8x1xi32>
      %14 = arith.addi %13, %12 : vector<8x1xi32>
      %c8_i32_8 = arith.constant 8 : i32
      %15 = vector.broadcast %c8_i32_8 : i32 to vector<8x1xi32>
      %16 = arith.cmpi slt, %14, %15 : vector<8x1xi32>
      %17 = tpu.iota {dimensions = array<i32: 1>} : vector<8x16xi32>
      %18 = vector.broadcast %10 : vector<8x1xi32> to vector<8x16xi32>
      %19 = arith.cmpi eq, %17, %18 : vector<8x16xi32>
      %20 = arith.extui %19 : vector<8x16xi1> to vector<8x16xi32>
      %21 = arith.sitofp %20 : vector<8x16xi32> to vector<8x16xf32>
      %cst = arith.constant dense<0xFF800000> : vector<8xf32>
      %22 = vector.multi_reduction <maximumf>, %9, %cst [1] : vector<8x16xf32> to vector<8xf32>
      %23 = vector.shape_cast %22 : vector<8xf32> to vector<8x1xf32>
      %24 = vector.broadcast %23 : vector<8x1xf32> to vector<8x16xf32>
      %25 = arith.subf %9, %24 : vector<8x16xf32>
      %26 = math.exp %25 : vector<8x16xf32>
      %cst_9 = arith.constant dense<0.000000e+00> : vector<8xf32>
      %27 = vector.multi_reduction <add>, %26, %cst_9 [1] : vector<8x16xf32> to vector<8xf32>
      %28 = vector.shape_cast %27 : vector<8xf32> to vector<8x1xf32>
      %29 = arith.mulf %9, %21 : vector<8x16xf32>
      %cst_10 = arith.constant dense<0.000000e+00> : vector<8xf32>
      %30 = vector.multi_reduction <add>, %29, %cst_10 [1] : vector<8x16xf32> to vector<8xf32>
      %31 = vector.shape_cast %30 : vector<8xf32> to vector<8x1xf32>
      %32 = arith.subf %31, %23 : vector<8x1xf32>
      %33 = math.log %28 : vector<8x1xf32>
      %34 = arith.subf %32, %33 : vector<8x1xf32>
      %35 = math.exp %34 : vector<8x1xf32>
      %36 = vector.broadcast %11 : vector<1x16xf32> to vector<8x16xf32>
      %37 = arith.mulf %36, %21 : vector<8x16xf32>
      %cst_11 = arith.constant dense<0.000000e+00> : vector<8xf32>
      %38 = vector.multi_reduction <add>, %37, %cst_11 [1] : vector<8x16xf32> to vector<8xf32>
      %39 = vector.shape_cast %38 : vector<8xf32> to vector<8x1xf32>
      %cst_12 = arith.constant 1.000000e+00 : f32
      %40 = vector.broadcast %cst_12 : f32 to vector<8x1xf32>
      %41 = arith.subf %40, %35 : vector<8x1xf32>
      %42 = arith.mulf %41, %41 : vector<8x1xf32>
      %cst_13 = arith.constant 0.000000e+00 : f32
      %43 = vector.broadcast %cst_13 : f32 to vector<8x1xf32>
      %44 = arith.subf %43, %39 : vector<8x1xf32>
      %45 = arith.mulf %44, %42 : vector<8x1xf32>
      %46 = arith.mulf %45, %34 : vector<8x1xf32>
      %cst_14 = arith.constant 0.000000e+00 : f32
      %47 = vector.broadcast %cst_14 : f32 to vector<8x1xf32>
      %48 = arith.select %16, %46, %47 : vector<8x1xi1>, vector<8x1xf32>
      %cst_15 = arith.constant dense<0.000000e+00> : vector<1xf32>
      %49 = vector.multi_reduction <add>, %48, %cst_15 [0] : vector<8x1xf32> to vector<1xf32>
      %50 = vector.shape_cast %49 : vector<1xf32> to vector<1x1xf32>
      %51 = tpu.iota {dimensions = array<i32: 0>} : vector<8x128xi32>
      %52 = tpu.iota {dimensions = array<i32: 1>} : vector<8x128xi32>
      %c0_16 = arith.constant 0 : index
      %c0_17 = arith.constant 0 : index
      %53 = vector.load %arg5[%c0_16, %c0_17] : memref<8x128xf32, #tpu.memory_space<vmem>>, vector<8x128xf32>
      %c0_i32_18 = arith.constant 0 : i32
      %54 = vector.broadcast %c0_i32_18 : i32 to vector<8x128xi32>
      %55 = arith.cmpi eq, %51, %54 : vector<8x128xi32>
      %c0_i32_19 = arith.constant 0 : i32
      %56 = vector.broadcast %c0_i32_19 : i32 to vector<8x128xi32>
      %57 = arith.cmpi eq, %52, %56 : vector<8x128xi32>
      %58 = arith.andi %55, %57 : vector<8x128xi1>
      %cst_20 = arith.constant 0.000000e+00 : f32
      %59 = vector.shape_cast %50 : vector<1x1xf32> to vector<1x1xf32>
      %60 = vector.broadcast %59 : vector<1x1xf32> to vector<8x128xf32>
      %61 = vector.broadcast %cst_20 : f32 to vector<8x128xf32>
      %62 = arith.select %58, %60, %61 : vector<8x128xi1>, vector<8x128xf32>
      %63 = arith.addf %53, %62 : vector<8x128xf32>
      %c0_21 = arith.constant 0 : index
      %c0_22 = arith.constant 0 : index
      %64 = vector.load %arg5[%c0_21, %c0_22] : memref<8x128xf32, #tpu.memory_space<vmem>>, vector<8x128xf32>
      tpu.vector_store %arg5[%c0_21, %c0_22], %63 {strides = array<i32>} : memref<8x128xf32, #tpu.memory_space<vmem>>, vector<8x128xf32>,
    } else {
    }
    return
  }
  func.func @transform_0(%arg0: i32, %arg1: i32) -> (i32, i32) {
    %c1_i32 = arith.constant 1 : i32
    %0 = arith.muli %arg0, %c1_i32 : i32
    %1 = arith.addi %0, %arg1 : i32
    %c0_i32 = arith.constant 0 : i32
    %2 = arith.minsi %1, %c0_i32 : i32
    %c0_i32_0 = arith.constant 0 : i32
    %c0_i32_1 = arith.constant 0 : i32
    return %2, %c0_i32_0 : i32, i32
  }
  func.func @transform_1(%arg0: i32, %arg1: i32) -> (i32, i32) {
    %c1_i32 = arith.constant 1 : i32
    %0 = arith.muli %arg0, %c1_i32 : i32
    %1 = arith.addi %0, %arg1 : i32
    %c0_i32 = arith.constant 0 : i32
    %2 = arith.minsi %1, %c0_i32 : i32
    %c0_i32_0 = arith.constant 0 : i32
    %c0_i32_1 = arith.constant 0 : i32
    return %2, %c0_i32_0 : i32, i32
  }
  func.func @transform_2(%arg0: i32, %arg1: i32) -> (i32, i32) {
    %c0_i32 = arith.constant 0 : i32
    %c0_i32_0 = arith.constant 0 : i32
    %c0_i32_1 = arith.constant 0 : i32
    return %c0_i32, %c0_i32_0 : i32, i32
  }
  func.func @transform_3(%arg0: i32, %arg1: i32) -> (i32, i32) {
    %c0_i32 = arith.constant 0 : i32
    %c0_i32_0 = arith.constant 0 : i32
    return %arg0, %c0_i32 : i32, i32
  }
}

</mosaic_0001>

<bundles_post_ra>
// kernel: tpu_custom_call.1
= control target key start
LH: loop header
LB: loop body
LE: loop exit
PB: predicated region body
PF: predicated region fallthrough
CT: control target
= control target key end

     0   :  { %vm96_vm0 = vcmask 130048   ;;  %s244_s0 = inlined_call_operand.vmem [shape: f32[8,16], index: 0, kind: input, shape index: {}]   ;;  %s245_s1 = inlined_call_operand.vmem [shape: s32[8,1], index: 1, kind: input, shape index: {}]   ;;  %s246_s2 = inlined_call_operand.vmem [shape: f32[1,16], index: 2, kind: input, shape index: {}]   ;;  %s247_s3 = inlined_call_operand.hbm [shape: f32[8,128], index: 3, kind: output, shape index: {}]  }
   0x1   :  { %v80_v0 = vld [vmem:[%s244_s0] sm:$0xff] }
   0x2   :  { %8 = vsyncpa [#allocation3], 0  ;;  %v97_v1 = vsel %vm96_vm0, %v80_v0, -inf  ;;  %v205_v2 = vmov 0   ;;  %v81_v3 = vld [vmem:[%s245_s1] sm:$0xff]  ;;  %v83_v7 = vlaneseq  ;;  %v206_v10 = vmov 0.0  }
   0x3   :  { %176 = vset.pattern.permute.xlu0 %v205_v2  ;;  %v172_v14 = vld [vmem:[%s246_s2] ss:$0 sm:$0xff]  ;;  %s207_s1 = smov [#allocation2]  }
   0x4   :  { %98 = vmax.xlane.f32.xlu0 %v97_v1  ;;  %v89_v8 = vand.u32 127, %v83_v7  ;;  %v84_v34 = vshrl.u32 %v83_v7, 7  ;;  %s151_s2 = sshll.u32 %s207_s1, 4  ;;  %s152_s2 = int_to_ptr.vmem [resolvable:$true] %s151_s2 }
   0x5   :  { %s183_s17 = scalar_lea.vmem %s152_s2, 128  ;;  %p188_p1 = scmp.lt.s32.totalorder %s152_s2, %s152_s2 }
   0x6   :  { %vm139_vm2 = vcmp.eq.s32.totalorder %v84_v34, 0  ;;  %vm140_vm3 = vcmp.eq.s32.totalorder %v89_v8, 0  ;;  %p184_p0 = scmp.ne.s32.totalorder %s152_s2, %s183_s17  ;;  %p189_p2 = scmp.lt.s32.totalorder %s183_s17, %s183_s17 }
   0x7   :  { %vm141_vm4 = vmand %vm139_vm2, %vm140_vm3 }
   0x8   :  { %p190_p3 = por %p189_p2, %p188_p1 }
   0xa   :  { %p191_p4 = pnand %p190_p3, %p184_p0 }
  0x1a   :  { %91 = vperm.xlu0 %176, %v81_v3  }
  0x8d   :  { %v99_v4 = vpop.xlane.xlu0 %98 }
  0x8e   :  { %v100_v5 = vsub.f32 %v80_v0, %v99_v4 }
  0x90   :  { %v101_v6 = vmul.f32 1.442695, %v100_v5 }
  0x92   :  { %177 = vpow2.f32 %v101_v6 }
  0x95   :  { %v92_v9 = vpop.permute.xlu0 %91 }
  0x96   :  { %vm93_vm1 = vcmp.eq.s32.totalorder %v89_v8, %v92_v9 }
  0x97   :  { %v171_v11 = vsel %vm93_vm1, 1.0, %v206_v10 }
  0x98   :  { %v106_v12 = vmul.f32 %v171_v11, %v80_v0  ;;  %v122_v17 = vmul.f32 %v172_v14, %v171_v11 }
  0x9a   :  { %v107_v16 = vsel %vm96_vm0, %v106_v12, 0.0  ;;  %v123_v18 = vsel %vm96_vm0, %v122_v17, 0.0 }
  0x9f   :  { %v178_v13 = vpop.eup %177 }
  0xa0   :  { %v103_v15 = vsel %vm96_vm0, %v178_v13, 0.0 }
  0xa1   :  { %104 = vadd.xlane.f32.xlu1 %v103_v15 }
  0xa5   :  { %108 = vadd.xlane.f32.xlu1 %v107_v16 }
  0xa9   :  { %124 = vadd.xlane.f32.xlu1 %v123_v18 }
 0x12a   :  { %v105_v19 = vpop.xlane.xlu1 %104 }
 0x12b   :  { %179 = vlog2.f32 %v105_v19 }
 0x12e   :  { %v109_v20 = vpop.xlane.xlu1 %108 }
 0x12f   :  { %v110_v23 = vsub.f32 %v109_v20, %v99_v4 }
 0x132   :  { %v125_v27 = vpop.xlane.xlu1 %124 }
 0x133   :  { %v128_v30 = vsub.f32 0.0, %v125_v27 }
 0x138   :  { %v180_v21 = vpop.eup %179 }
 0x139   :  { %v112_v22 = vmul.f32 0.6931472, %v180_v21 }
 0x13b   :  { %v113_v24 = vsub.f32 %v110_v23, %v112_v22 }
 0x13d   :  { %v114_v25 = vmul.f32 1.442695, %v113_v24 }
 0x13f   :  { %181 = vpow2.f32 %v114_v25 }
 0x14c   :  { %v182_v26 = vpop.eup %181 }
 0x14d   :  { %v126_v28 = vsub.f32 1.0, %v182_v26 }
 0x14f   :  { %v127_v29 = vmul.f32 %v126_v28, %v126_v28 }
 0x151   :  { %v129_v31 = vmul.f32 %v128_v30, %v127_v29 }
 0x153   :  { %v130_v32 = vmul.f32 %v129_v31, %v113_v24 }
 0x155   :  { %v132_v33 = vrot.slane %v130_v32, 4 }
 0x157   :  { %v133_v35 = vadd.f32 %v132_v33, %v130_v32 }
 0x159   :  { %v134_v36 = vrot.slane %v133_v35, 2 }
 0x15b   :  { %v135_v37 = vadd.f32 %v134_v36, %v133_v35 }
 0x15d   :  { %v136_v38 = vrot.slane %v135_v37, 1 }
 0x15f   :  { %v137_v39 = vadd.f32 %v136_v38, %v135_v37 }
 0x161   :  { %v142_v40 = vsel %vm141_vm4, %v137_v39, 0.0 }
 0x162   :  { %144 = vst [vmem:[#allocation2] sm:$0xff] %v142_v40 }
 0x163   :  { %194 = shalt.err (!%p191_p4)
}
 0x164   :  { %154 = dma.vmem_to_hbm [thread:$0]  %s152_s2, 128, %s247_s3, [#allocation3]  }
 0x165   :  { %203 = dma.done.wait [#allocation3], 128  }
 0x166   :  { %204 = vsyncadd [#allocation3], 4294967168 }
 0x167   :  { %158 = vsyncpa [#allocation3], 1 }

</bundles_post_ra>
